<compile_context>
chip_gen: v7x
topology: tpu7x:2x2x1
jax: 0.10.0
libtpu: 0.0.40
codegen_flags: <defaults>
</compile_context>

<pallas_src>
import jax
import jax.numpy as jnp
from jax.experimental import pallas as pl
from jax.experimental.pallas import tpu as pltpu


def _round_up(n: int, m: int) -> int:
    return ((n + m - 1) // m) * m


def film_kernel(g_ref, b_ref, x_ref, o_ref):
    """One (rows, time) tile of FiLM: pure elementwise FMA.

    g_ref, b_ref: (tile_r, 1)       per-row scale / shift (broadcast over lanes)
    x_ref, o_ref: (tile_r, tile_t)  current tile
    """
    o_ref[...] = x_ref[...] * g_ref[...] + b_ref[...]


def film(x, cond, w, bias):
    """FiLM forward.

    x   : (B, C, T)
    cond: (B, cond_dim)
    w   : (2C, cond_dim)   (PyTorch nn.Linear weight layout)
    bias: (2C,)
    """
    B, C, T = x.shape
    cond_dim = cond.shape[-1]
    assert w.shape == (2 * C, cond_dim) and bias.shape == (2 * C,)

    # ---- Hoisted adaptor: grid-invariant tiny matmul done once in plain JAX ----
    gb = jnp.dot(cond, w.T, preferred_element_type=jnp.float32) + bias.astype(jnp.float32)
    g = gb[:, :C].reshape(B * C, 1).astype(x.dtype)   # (B*C, 1)
    b = gb[:, C:].reshape(B * C, 1).astype(x.dtype)   # (B*C, 1)

    # ---- Flatten to (B*C, T): full sublane packing + lane-dense DMA ----
    rows = B * C
    xf = x.reshape(rows, T)
    itemsize = x.dtype.itemsize
    T128 = _round_up(T, 128)

    # ---- Generation-aware block / VMEM budgets ----
    try:
        info = pltpu.get_tpu_info()
        vmem_cap = int(getattr(info, "vmem_capacity_bytes", 64 * 1024 * 1024))
    except Exception:  # pragma: no cover - conservative fallback
        vmem_cap = 64 * 1024 * 1024
    if vmem_cap >= 128 * 1024 * 1024:          # v5e / v6e: 128 MiB VMEM
        block_budget = 16 * 1024 * 1024
        vmem_limit_cap = 96 * 1024 * 1024
    else:                                       # v7x: 64 MiB per TensorCore
        block_budget = 8 * 1024 * 1024
        vmem_limit_cap = 48 * 1024 * 1024

    # ---- Row (sublane) tile: multiple of 8, sized so a >=512-lane block fits ----
    if rows <= 8:
        tile_r = rows                            # equals full dim -> always legal
    else:
        min_lanes = min(T128, 512)
        cap_r = max(8, (block_budget // (min_lanes * itemsize)) // 8 * 8)
        tile_r = min(_round_up(rows, 8), cap_r)

    # ---- Lane (time) tile: as many 128-lane groups as fit in the byte budget ----
    cap_t = max(128, (block_budget // (tile_r * itemsize)) // 128 * 128)
    tile_t = min(T128, cap_t)

    # Keep enough grid steps for DMA/compute overlap and v7x megacore sharding.
    def _n_steps(tr, tt):
        return pl.cdiv(rows, tr) * pl.cdiv(T, tt)

    while _n_steps(tile_r, tile_t) < 8 and tile_t > 512:
        tile_t = _round_up(max(128, tile_t // 2), 128)

    grid = (pl.cdiv(rows, tile_r), pl.cdiv(T, tile_t))

    block_bytes = tile_r * tile_t * itemsize
    vmem_limit = int(min(vmem_limit_cap, max(32 * 1024 * 1024, 6 * block_bytes)))

    out = pl.pallas_call(
        film_kernel,
        out_shape=jax.ShapeDtypeStruct((rows, T), x.dtype),
        grid_spec=pltpu.PrefetchScalarGridSpec(
            num_scalar_prefetch=0,
            grid=grid,
            in_specs=[
                pl.BlockSpec((tile_r, 1), lambda r, t: (r, 0)),        # g (tiny)
                pl.BlockSpec((tile_r, 1), lambda r, t: (r, 0)),        # b (tiny)
                pl.BlockSpec((tile_r, tile_t), lambda r, t: (r, t)),   # x tile
            ],
            out_specs=pl.BlockSpec((tile_r, tile_t), lambda r, t: (r, t)),
        ),
        compiler_params=pltpu.CompilerParams(
            dimension_semantics=("parallel", "parallel"),
            vmem_limit_bytes=vmem_limit,
        ),
    )(g, b, xf)

    return out.reshape(B, C, T)


if __name__ == "__main__":
    cond_dim = 3
    num_features = 8          # C
    B, T = 2, 300             # ragged T exercises the masked partial last block

    key = jax.random.PRNGKey(0)
    kx, kc, kw, kb = jax.random.split(key, 4)

    x = jax.random.normal(kx, (B, num_features, T), dtype=jnp.float32)
    cond = jax.random.normal(kc, (B, cond_dim), dtype=jnp.float32)

    # Deterministic synthetic parameters (nn.Linear(cond_dim, 2*num_features) shapes).
    bound = 1.0 / jnp.sqrt(cond_dim)
    w = jax.random.uniform(kw, (2 * num_features, cond_dim),
                           minval=-bound, maxval=bound, dtype=jnp.float32)
    bias = jax.random.uniform(kb, (2 * num_features,),
                              minval=-bound, maxval=bound, dtype=jnp.float32)

    out = jax.block_until_ready(film(x, cond, w, bias))

    # Pure-JAX reference (mirrors the PyTorch forward).
    gb_ref = cond @ w.T + bias                      # (B, 2C)
    g_ref = gb_ref[:, :num_features][:, :, None]    # (B, C, 1)
    b_ref = gb_ref[:, num_features:][:, :, None]    # (B, C, 1)
    ref = x * g_ref + b_ref

    assert out.shape == ref.shape and out.dtype == ref.dtype
    assert jnp.allclose(out, ref, atol=1e-5, rtol=1e-5), "mismatch vs reference"
    print("KERNEL_OK")
</pallas_src>

<mosaic_0001>
module attributes {stable_mosaic.version = 11 : i64} {
  func.func @film_kernel(%arg0: i32, %arg1: i32, %arg2: memref<16x1xf32, #tpu.memory_space<vmem>>, %arg3: memref<16x1xf32, #tpu.memory_space<vmem>>, %arg4: memref<16x384xf32, #tpu.memory_space<vmem>>, %arg5: memref<16x384xf32, #tpu.memory_space<vmem>>) attributes {dimension_semantics = [#tpu.dimension_semantics<parallel>, #tpu.dimension_semantics<parallel>], iteration_bounds = array<i64: 1, 1>, scalar_prefetch = 0 : i64, scratch_operands = 0 : i64, tpu.core_type = #tpu.core_type<tc>, window_params = [{transform_indices = @transform_0, window_bounds = array<i64: 16, 1>}, {transform_indices = @transform_1, window_bounds = array<i64: 16, 1>}, {transform_indices = @transform_2, window_bounds = array<i64: 16, 384>}, {transform_indices = @transform_3, window_bounds = array<i64: 16, 384>}]} {
    %c0 = arith.constant 0 : index
    %c0_0 = arith.constant 0 : index
    %0 = vector.load %arg4[%c0, %c0_0] : memref<16x384xf32, #tpu.memory_space<vmem>>, vector<16x384xf32>
    %c0_1 = arith.constant 0 : index
    %c0_2 = arith.constant 0 : index
    %1 = vector.load %arg2[%c0_1, %c0_2] : memref<16x1xf32, #tpu.memory_space<vmem>>, vector<16x1xf32>
    %2 = vector.broadcast %1 : vector<16x1xf32> to vector<16x384xf32>
    %3 = arith.mulf %0, %2 : vector<16x384xf32>
    %c0_3 = arith.constant 0 : index
    %c0_4 = arith.constant 0 : index
    %4 = vector.load %arg3[%c0_3, %c0_4] : memref<16x1xf32, #tpu.memory_space<vmem>>, vector<16x1xf32>
    %5 = vector.broadcast %4 : vector<16x1xf32> to vector<16x384xf32>
    %6 = arith.addf %3, %5 : vector<16x384xf32>
    %c0_5 = arith.constant 0 : index
    %c0_6 = arith.constant 0 : index
    %7 = vector.load %arg5[%c0_5, %c0_6] : memref<16x384xf32, #tpu.memory_space<vmem>>, vector<16x384xf32>
    tpu.vector_store %arg5[%c0_5, %c0_6], %6 {strides = array<i32>} : memref<16x384xf32, #tpu.memory_space<vmem>>, vector<16x384xf32>,
    return
  }
  func.func @transform_0(%arg0: i32, %arg1: i32) -> (i32, i32) {
    %c0_i32 = arith.constant 0 : i32
    %c0_i32_0 = arith.constant 0 : i32
    return %arg0, %c0_i32 : i32, i32
  }
  func.func @transform_1(%arg0: i32, %arg1: i32) -> (i32, i32) {
    %c0_i32 = arith.constant 0 : i32
    %c0_i32_0 = arith.constant 0 : i32
    return %arg0, %c0_i32 : i32, i32
  }
  func.func @transform_2(%arg0: i32, %arg1: i32) -> (i32, i32) {
    %c0_i32 = arith.constant 0 : i32
    return %arg0, %arg1 : i32, i32
  }
  func.func @transform_3(%arg0: i32, %arg1: i32) -> (i32, i32) {
    %c0_i32 = arith.constant 0 : i32
    return %arg0, %arg1 : i32, i32
  }
}

</mosaic_0001>

<bundles_post_ra>
// kernel: tpu_custom_call.1
= control target key start
LH: loop header
LB: loop body
LE: loop exit
PB: predicated region body
PF: predicated region fallthrough
CT: control target
= control target key end

     0   :  { %8 = vsyncpa [#allocation3], 0  ;;  %s216_s0 = inlined_call_operand.vmem [shape: f32[16,1], index: 0, kind: input, shape index: {}]   ;;  %s217_s1 = inlined_call_operand.vmem [shape: f32[16,1], index: 1, kind: input, shape index: {}]   ;;  %s218_s2 = inlined_call_operand.hbm [shape: f32[16,300], index: 2, kind: input, shape index: {}]   ;;  %s219_s3 = inlined_call_operand.hbm [shape: f32[16,300], index: 3, kind: output, shape index: {}]  }
   0x1   :  { %9 = vsyncpa [#allocation4], 0  ;;  %s149_s12 = smov [#allocation2]   ;;  %s101_s16 = scalar_lea.hbm %s218_s2, 768 }
   0x2   :  { %s19_s13 = sshll.u32 %s149_s12, 4  ;;  %p102_p0 = scmp.ne.s32.totalorder %s218_s2, %s101_s16  ;;  %s20_s13 = int_to_ptr.vmem [resolvable:$true] %s19_s13 }
   0x3   :  { %p105_p1 = scmp.lt.u32.totalorder %s101_s16, %s218_s2 }
   0x5   :  { %p107_p2 = pnand %p105_p1, %p102_p0 }
   0x7   :  { %110 = shalt.err (!%p107_p2)
}
   0x8   :  { %s111_s21 = scalar_lea.vmem %s20_s13, 768  ;;  %p116_p4 = scmp.lt.s32.totalorder %s20_s13, %s20_s13 }
   0x9   :  { %p112_p3 = scmp.ne.s32.totalorder %s20_s13, %s111_s21  ;;  %p117_p5 = scmp.lt.s32.totalorder %s111_s21, %s111_s21 }
   0xb   :  { %p118_p6 = por %p117_p5, %p116_p4 }
   0xd   :  { %p119_p7 = pnand %p118_p6, %p112_p3 }
   0xf   :  { %122 = shalt.err (!%p119_p7)
}
  0x10   :  { %s150_s22 = smov 384   ;;  %s151_s23 = smov 24  }
  0x11   :  { %25 = dma.hbm_to_vmem [thread:$0]  %s218_s2, 768, %s20_s13, [#allocation3], %s150_s22, %s150_s22, %s151_s23  }
  0x12   :  { %145 = dma.done.wait [#allocation3], 768  }
  0x13   :  { %146 = vsyncadd [#allocation3], 4294966528  ;;  %v152_v0 = vmov 0   ;;  %v53_v1 = vld [vmem:[%s217_s1] sm:$0xff]  ;;  %v54_v3 = vld [vmem:[%s217_s1 + $0x8] sm:$0xff]  ;;  %s153_s1 = smov [#allocation5]  }
  0x14   :  { %100 = vset.pattern.permute.xlu1 %v152_v0  ;;  %99 = vset.pattern.permute.xlu0 %v152_v0  ;;  %v35_v2 = vld [vmem:[%s216_s0] sm:$0xff]  ;;  %v36_v4 = vld [vmem:[%s216_s0 + $0x8] sm:$0xff]  ;;  %v31_v7 = vld [vmem:[#allocation2 + $0x10] sm:$0xff]  ;;  %s82_s6 = sshll.u32 %s153_s1, 4  ;;  %s83_s6 = int_to_ptr.vmem [resolvable:$true] %s82_s6 }
  0x15   :  { %57 = vperm.xlu1 %100, %v53_v1   ;;  %39 = vperm.xlu0 %99, %v35_v2   ;;  %v29_v5 = vld [vmem:[#allocation2] sm:$0xff]  ;;  %v30_v6 = vld [vmem:[#allocation2 + $0x8] sm:$0xff]  ;;  %v32_v13 = vld [vmem:[#allocation2 + $0x18] sm:$0xff]  ;;  %s123_s0 = scalar_lea.vmem %s83_s6, 768  ;;  %p128_p9 = scmp.lt.s32.totalorder %s83_s6, %s83_s6 }
  0x16   :  { %v33_v14 = vld [vmem:[#allocation2 + $0x20] sm:$0xff]  ;;  %v34_v15 = vld [vmem:[#allocation2 + $0x28] sm:$0xff]  ;;  %p124_p8 = scmp.ne.s32.totalorder %s83_s6, %s123_s0  ;;  %p129_p10 = scmp.lt.s32.totalorder %s123_s0, %s123_s0 }
  0x18   :  { %p130_p11 = por %p129_p10, %p128_p9 }
  0x19   :  { %62 = vperm.xlu1 %100, %v54_v3   ;;  %44 = vperm.xlu0 %99, %v36_v4  }
  0x1a   :  { %p131_p12 = pnand %p130_p11, %p124_p8 }
  0x94   :  { %v58_v8 = vpop.permute.xlu1 %57  ;;  %v40_v9 = vpop.permute.xlu0 %39 }
  0x95   :  { %v47_v10 = vmul.f32 %v40_v9, %v29_v5  ;;  %v48_v11 = vmul.f32 %v40_v9, %v30_v6  ;;  %v49_v12 = vmul.f32 %v40_v9, %v31_v7 }
  0x97   :  { %v65_v16 = vadd.f32 %v58_v8, %v47_v10  ;;  %v66_v17 = vadd.f32 %v58_v8, %v48_v11  ;;  %v67_v18 = vadd.f32 %v58_v8, %v49_v12 }
  0x98   :  { %v45_v19 = vpop.permute.xlu0 %44  ;;  %v63_v23 = vpop.permute.xlu1 %62 }
  0x99   :  { %71 = vst [vmem:[#allocation5] sm:$0xff] %v65_v16  ;;  %72 = vst [vmem:[#allocation5 + $0x8] sm:$0xff] %v66_v17  ;;  %v50_v20 = vmul.f32 %v45_v19, %v32_v13  ;;  %v51_v21 = vmul.f32 %v45_v19, %v33_v14  ;;  %v52_v22 = vmul.f32 %v45_v19, %v34_v15 }
  0x9a   :  { %73 = vst [vmem:[#allocation5 + $0x10] sm:$0xff] %v67_v18 }
  0x9b   :  { %v68_v24 = vadd.f32 %v63_v23, %v50_v20  ;;  %v69_v25 = vadd.f32 %v63_v23, %v51_v21  ;;  %v70_v26 = vadd.f32 %v63_v23, %v52_v22 }
  0x9d   :  { %74 = vst [vmem:[#allocation5 + $0x18] sm:$0xff] %v68_v24  ;;  %75 = vst [vmem:[#allocation5 + $0x20] sm:$0xff] %v69_v25 }
  0x9e   :  { %76 = vst [vmem:[#allocation5 + $0x28] sm:$0xff] %v70_v26 }
  0x9f   :  { %134 = shalt.err (!%p131_p12)
}
  0xa0   :  { %s135_s9 = scalar_lea.hbm %s219_s3, 768 }
  0xa1   :  { %p136_p13 = scmp.ne.s32.totalorder %s219_s3, %s135_s9  ;;  %p139_p0 = scmp.lt.u32.totalorder %s135_s9, %s219_s3 }
  0xa3   :  { %p141_p1 = pnand %p139_p0, %p136_p13 }
  0xa5   :  { %144 = shalt.err (!%p141_p1)
}
  0xa6   :  { %88 = dma.vmem_to_hbm [thread:$0]  %s83_s6, 768, %s219_s3, [#allocation4], %s150_s22, %s150_s22, %s151_s23  }
  0xa7   :  { %147 = dma.done.wait [#allocation4], 768  }
  0xa8   :  { %148 = vsyncadd [#allocation4], 4294966528 }
  0xa9   :  { %92 = vsyncpa [#allocation3], 1 }
  0xaa   :  { %93 = vsyncpa [#allocation4], 1 }

</bundles_post_ra>
